<compile_context>
chip_gen: v7x
topology: tpu7x:2x2x1
jax: 0.10.0
libtpu: 0.0.40
codegen_flags: <defaults>
</compile_context>

<pallas_src>
import jax
import jax.numpy as jnp
from jax import lax
from jax.experimental import pallas as pl
from jax.experimental.pallas import tpu as pltpu

N_CLS = 8
HIDDEN = 256
BN_EPS = 1e-5


def fusion_head_kernel(z_ref,                 # (B, D)   fused audio+text features
                       gamma_ref, beta_ref,   # (1, D)   BatchNorm1d affine params
                       mean_ref, var_ref,     # (1, D)   BatchNorm1d running stats
                       w1_ref, b1_ref,        # (D, 256), (1, 256)  first Linear
                       w2_ref, b2_ref,        # (256, C), (1, C)    second Linear
                       out_ref):              # (B, C)
    # --- BatchNorm1d (eval mode, running stats) ---------------------------------
    inv_std = lax.rsqrt(var_ref[...] + BN_EPS)              # (1, D)  EUP rsqrt, one push
    zn = (z_ref[...] - mean_ref[...]) * (gamma_ref[...] * inv_std) + beta_ref[...]

    # --- Linear(D, 256) + ReLU ---------------------------------------------------
    h = jnp.dot(zn, w1_ref[...], preferred_element_type=jnp.float32) + b1_ref[...]
    h = jnp.maximum(h, 0.0)                                  # ReLU (full-width VPU)

    # Dropout(p) is the identity at inference -> omitted.

    # --- Linear(256, n_cls) ------------------------------------------------------
    out_ref[...] = (jnp.dot(h, w2_ref[...], preferred_element_type=jnp.float32)
                    + b2_ref[...])


def fusion_head_forward(z, params):
    """z: (B, a_dim + t_dim) f32. Returns logits (B, N_CLS) f32."""
    B = z.shape[0]
    vmem = pl.BlockSpec(memory_space=pltpu.MemorySpace.VMEM)   # whole array resident

    return pl.pallas_call(
        fusion_head_kernel,
        out_shape=jax.ShapeDtypeStruct((B, N_CLS), jnp.float32),
        in_specs=[vmem] * 9,
        out_specs=vmem,
    )(z.astype(jnp.float32),
      params['bn_gamma'], params['bn_beta'],
      params['bn_mean'], params['bn_var'],
      params['w1'], params['b1'],
      params['w2'], params['b2'])


def init_params(key, d_in):
    """Deterministic synthetic parameters matching FusionHead's shapes.

    Linear weights are stored pre-transposed to "x @ W" form:
      PyTorch Linear.weight is (out, in); we keep (in, out).
    """
    ks = jax.random.split(key, 8)

    def u(k, shape, scale):
        return jax.random.uniform(k, shape, jnp.float32, -scale, scale)

    k1 = 1.0 / jnp.sqrt(d_in)
    k2 = 1.0 / jnp.sqrt(HIDDEN)
    return {
        # BatchNorm1d(d_in): affine params + running stats (eval mode)
        'bn_gamma': u(ks[0], (1, d_in), 1.0) + 1.0,
        'bn_beta':  u(ks[1], (1, d_in), 0.5),
        'bn_mean':  u(ks[2], (1, d_in), 0.5),
        'bn_var':   jnp.abs(u(ks[3], (1, d_in), 1.0)) + 0.5,
        # Linear(d_in, 256)
        'w1': u(ks[4], (d_in, HIDDEN), k1),
        'b1': u(ks[5], (1, HIDDEN), k1),
        # Linear(256, N_CLS)
        'w2': u(ks[6], (HIDDEN, N_CLS), k2),
        'b2': u(ks[7], (1, N_CLS), k2),
    }


def _reference_forward(z, params):
    """Pure-JAX reference mirroring the PyTorch eval-mode forward."""
    z = z.astype(jnp.float32)
    zn = ((z - params['bn_mean']) / jnp.sqrt(params['bn_var'] + BN_EPS)
          * params['bn_gamma'] + params['bn_beta'])
    h = jnp.maximum(zn @ params['w1'] + params['b1'], 0.0)
    # Dropout identity at inference.
    return h @ params['w2'] + params['b2']


if __name__ == "__main__":
    key = jax.random.PRNGKey(0)
    k_in, k_par = jax.random.split(key)

    # Small shapes consistent with the module: fused feature vector z = [audio | text].
    # a_dim + t_dim = 128 keeps the feature axis lane-aligned; batch=8 fills sublanes.
    B, a_dim, t_dim = 8, 64, 64
    D = a_dim + t_dim

    z = jax.random.normal(k_in, (B, D), jnp.float32)
    params = init_params(k_par, D)

    logits = fusion_head_forward(z, params)
    logits = jax.block_until_ready(logits)

    ref = jax.block_until_ready(_reference_forward(z, params))
    assert logits.shape == (B, N_CLS)
    assert jnp.allclose(logits, ref, rtol=1e-4, atol=1e-4), (logits, ref)

    print("KERNEL_OK")
</pallas_src>

<mosaic_0001>
module attributes {stable_mosaic.version = 11 : i64} {
  func.func @fusion_head_kernel(%arg0: memref<8x128xf32, #tpu.memory_space<vmem>>, %arg1: memref<1x128xf32, #tpu.memory_space<vmem>>, %arg2: memref<1x128xf32, #tpu.memory_space<vmem>>, %arg3: memref<1x128xf32, #tpu.memory_space<vmem>>, %arg4: memref<1x128xf32, #tpu.memory_space<vmem>>, %arg5: memref<128x256xf32, #tpu.memory_space<vmem>>, %arg6: memref<1x256xf32, #tpu.memory_space<vmem>>, %arg7: memref<256x8xf32, #tpu.memory_space<vmem>>, %arg8: memref<1x8xf32, #tpu.memory_space<vmem>>, %arg9: memref<8x8xf32, #tpu.memory_space<vmem>>) attributes {dimension_semantics = [], scalar_prefetch = 0 : i64, scratch_operands = 0 : i64, tpu.core_type = #tpu.core_type<tc>} {
    %c0 = arith.constant 0 : index
    %c0_0 = arith.constant 0 : index
    %0 = vector.load %arg4[%c0, %c0_0] : memref<1x128xf32, #tpu.memory_space<vmem>>, vector<1x128xf32>
    %cst = arith.constant 9.99999974E-6 : f32
    %1 = vector.broadcast %cst : f32 to vector<1x128xf32>
    %2 = arith.addf %0, %1 : vector<1x128xf32>
    %3 = math.rsqrt %2 : vector<1x128xf32>
    %c0_1 = arith.constant 0 : index
    %c0_2 = arith.constant 0 : index
    %4 = vector.load %arg0[%c0_1, %c0_2] : memref<8x128xf32, #tpu.memory_space<vmem>>, vector<8x128xf32>
    %c0_3 = arith.constant 0 : index
    %c0_4 = arith.constant 0 : index
    %5 = vector.load %arg3[%c0_3, %c0_4] : memref<1x128xf32, #tpu.memory_space<vmem>>, vector<1x128xf32>
    %6 = vector.broadcast %5 : vector<1x128xf32> to vector<8x128xf32>
    %7 = arith.subf %4, %6 : vector<8x128xf32>
    %c0_5 = arith.constant 0 : index
    %c0_6 = arith.constant 0 : index
    %8 = vector.load %arg1[%c0_5, %c0_6] : memref<1x128xf32, #tpu.memory_space<vmem>>, vector<1x128xf32>
    %9 = arith.mulf %8, %3 : vector<1x128xf32>
    %10 = vector.broadcast %9 : vector<1x128xf32> to vector<8x128xf32>
    %11 = arith.mulf %7, %10 : vector<8x128xf32>
    %c0_7 = arith.constant 0 : index
    %c0_8 = arith.constant 0 : index
    %12 = vector.load %arg2[%c0_7, %c0_8] : memref<1x128xf32, #tpu.memory_space<vmem>>, vector<1x128xf32>
    %13 = vector.broadcast %12 : vector<1x128xf32> to vector<8x128xf32>
    %14 = arith.addf %11, %13 : vector<8x128xf32>
    %c0_9 = arith.constant 0 : index
    %c0_10 = arith.constant 0 : index
    %15 = vector.load %arg5[%c0_9, %c0_10] : memref<128x256xf32, #tpu.memory_space<vmem>>, vector<128x256xf32>
    %cst_11 = arith.constant dense<0.000000e+00> : vector<8x256xf32>
    %16 = tpu.matmul %14, %15, %cst_11 {dimension_numbers = #tpu.dot_dimension_numbers<[1], [0], [0], [1], [0, 0, 1, 1], [], []>} : vector<8x128xf32>, vector<128x256xf32>, vector<8x256xf32> -> vector<8x256xf32>
    %c0_12 = arith.constant 0 : index
    %c0_13 = arith.constant 0 : index
    %17 = vector.load %arg6[%c0_12, %c0_13] : memref<1x256xf32, #tpu.memory_space<vmem>>, vector<1x256xf32>
    %18 = vector.broadcast %17 : vector<1x256xf32> to vector<8x256xf32>
    %19 = arith.addf %16, %18 : vector<8x256xf32>
    %cst_14 = arith.constant 0.000000e+00 : f32
    %20 = vector.broadcast %cst_14 : f32 to vector<8x256xf32>
    %21 = arith.maximumf %19, %20 : vector<8x256xf32>
    %c0_15 = arith.constant 0 : index
    %c0_16 = arith.constant 0 : index
    %22 = vector.load %arg7[%c0_15, %c0_16] : memref<256x8xf32, #tpu.memory_space<vmem>>, vector<256x8xf32>
    %cst_17 = arith.constant dense<0.000000e+00> : vector<8x8xf32>
    %23 = tpu.matmul %21, %22, %cst_17 {dimension_numbers = #tpu.dot_dimension_numbers<[1], [0], [0], [1], [0, 0, 1, 1], [], []>} : vector<8x256xf32>, vector<256x8xf32>, vector<8x8xf32> -> vector<8x8xf32>
    %c0_18 = arith.constant 0 : index
    %c0_19 = arith.constant 0 : index
    %24 = vector.load %arg8[%c0_18, %c0_19] : memref<1x8xf32, #tpu.memory_space<vmem>>, vector<1x8xf32>
    %25 = vector.broadcast %24 : vector<1x8xf32> to vector<8x8xf32>
    %26 = arith.addf %23, %25 : vector<8x8xf32>
    %c0_20 = arith.constant 0 : index
    %c0_21 = arith.constant 0 : index
    %27 = vector.load %arg9[%c0_20, %c0_21] : memref<8x8xf32, #tpu.memory_space<vmem>>, vector<8x8xf32>
    tpu.vector_store %arg9[%c0_20, %c0_21], %26 {strides = array<i32>} : memref<8x8xf32, #tpu.memory_space<vmem>>, vector<8x8xf32>,
    return
  }
}

</mosaic_0001>

<bundles_post_ra>
// kernel: tpu_custom_call.1
= control target key start
LH: loop header
LB: loop body
LE: loop exit
PB: predicated region body
PF: predicated region fallthrough
CT: control target
= control target key end

     0   :  { %v434_v7 = vmov 0.0   ;;  %v48_v40 = vlaneseq  ;;  %s715_s0 = inlined_call_operand.vmem [shape: f32[8,128], index: 0, kind: input, shape index: {}]   ;;  %s716_s1 = inlined_call_operand.vmem [shape: f32[1,128], index: 1, kind: input, shape index: {}]   ;;  %s717_s2 = inlined_call_operand.vmem [shape: f32[1,128], index: 2, kind: input, shape index: {}]   ;;  %s718_s3 = inlined_call_operand.vmem [shape: f32[1,128], index: 3, kind: input, shape index: {}]   ;;  %s719_s4 = inlined_call_operand.vmem [shape: f32[1,128], index: 4, kind: input, shape index: {}]   ;;  %s720_s5 = inlined_call_operand.vmem [shape: f32[128,256], index: 5, kind: input, shape index: {}]   ;;  %s721_s6 = inlined_call_operand.vmem [shape: f32[1,256], index: 6, kind: input, shape index: {}]   ;;  %s722_s7 = inlined_call_operand.vmem [shape: f32[256,8], index: 7, kind: input, shape index: {}]   ;;  %s723_s8 = inlined_call_operand.vmem [shape: f32[1,8], index: 8, kind: input, shape index: {}]   ;;  %s724_s9 = inlined_call_operand.hbm [shape: f32[8,8], index: 9, kind: output, shape index: {}]  }
   0x1   :  { %v63_v0 = vld [vmem:[%s720_s5 + $0x8] sm:$0xff]  ;;  %v65_v1 = vld [vmem:[%s720_s5 + $0x18] sm:$0xff]  ;;  %v62_v2 = vld [vmem:[%s720_s5] sm:$0xff]  ;;  %170 = vmatprep.mubr.f32.mxu0 %v434_v7 }
   0x2   :  { %v342_v3 = vpack.c.bf16 %v65_v1, %v63_v0  ;;  %v64_v4 = vld [vmem:[%s720_s5 + $0x10] sm:$0xff]  ;;  %v67_v5 = vld [vmem:[%s720_s5 + $0x28] sm:$0xff]  ;;  %v69_v6 = vld [vmem:[%s720_s5 + $0x38] sm:$0xff]  ;;  %v603_v58 = vshrl.u32 %v48_v40, 7 }
   0x3   :  { %v344_v8 = vpack.c.bf16 %v64_v4, %v62_v2  ;;  %v346_v9 = vpack.c.bf16 %v69_v6, %v67_v5  ;;  %v66_v10 = vld [vmem:[%s720_s5 + $0x20] sm:$0xff]  ;;  %v68_v11 = vld [vmem:[%s720_s5 + $0x30] sm:$0xff]  ;;  %v71_v12 = vld [vmem:[%s720_s5 + $0x48] sm:$0xff] }
   0x4   :  { %343 = vmatprep.subr.bf16.mxu0 %v342_v3  ;;  %v73_v13 = vld [vmem:[%s720_s5 + $0x58] sm:$0xff]  ;;  %v348_v14 = vpack.c.bf16 %v68_v11, %v66_v10  ;;  %v70_v16 = vld [vmem:[%s720_s5 + $0x40] sm:$0xff]  ;;  %v72_v17 = vld [vmem:[%s720_s5 + $0x50] sm:$0xff] }
   0x5   :  { %345 = vmatpush1.bf16.msra.mxu0 %v344_v8  ;;  %v350_v15 = vpack.c.bf16 %v73_v13, %v71_v12  ;;  %v75_v18 = vld [vmem:[%s720_s5 + $0x68] sm:$0xff]  ;;  %v77_v19 = vld [vmem:[%s720_s5 + $0x78] sm:$0xff]  ;;  %v352_v20 = vpack.c.bf16 %v72_v17, %v70_v16  ;;  %v74_v22 = vld [vmem:[%s720_s5 + $0x60] sm:$0xff] }
   0x6   :  { %347 = vmatprep.subr.bf16.mxu0 %v346_v9  ;;  %v354_v21 = vpack.c.bf16 %v77_v19, %v75_v18  ;;  %v76_v23 = vld [vmem:[%s720_s5 + $0x70] sm:$0xff]  ;;  %v79_v24 = vld [vmem:[%s720_s5 + $0x88] sm:$0xff]  ;;  %v81_v25 = vld [vmem:[%s720_s5 + $0x98] sm:$0xff] }
   0x7   :  { %v33_v26 = vld [vmem:[%s719_s4] sm:$0x1]  ;;  %v80_v28 = vld [vmem:[%s720_s5 + $0x90] sm:$0xff]  ;;  %v356_v31 = vpack.c.bf16 %v76_v23, %v74_v22  ;;  %v83_v32 = vld [vmem:[%s720_s5 + $0xa8] sm:$0xff]  ;;  %v358_v35 = vpack.c.bf16 %v81_v25, %v79_v24 }
   0x8   :  { %v78_v27 = vld [vmem:[%s720_s5 + $0x80] sm:$0xff]  ;;  %v34_v29 = vadd.f32 1e-05, %v33_v26  ;;  %v85_v33 = vld [vmem:[%s720_s5 + $0xb8] sm:$0xff]  ;;  %v196_v34 = vld [vmem:[%s722_s7 + $0x88] sm:$0xff] }
   0x9   :  { %349 = vmatpush1.bf16.msra.mxu0 %v348_v14  ;;  %v195_v30 = vld [vmem:[%s722_s7 + $0x80] sm:$0xff]  ;;  %v180_v38 = vld [vmem:[%s722_s7 + $0x8] sm:$0xff]  ;;  %v197_v39 = vld [vmem:[%s722_s7 + $0x90] sm:$0xff]  ;;  %v360_v48 = vpack.c.bf16 %v80_v28, %v78_v27  ;;  %v362_v52 = vpack.c.bf16 %v85_v33, %v83_v32 }
   0xa   :  { %351 = vmatprep.subr.bf16.mxu0 %v350_v15  ;;  %408 = vrsqrt.f32 %v34_v29  ;;  %v374_v36 = vpack.c.bf16 %v196_v34, %v195_v30  ;;  %v179_v37 = vld [vmem:[%s722_s7] sm:$0xff]  ;;  %v198_v42 = vld [vmem:[%s722_s7 + $0x98] sm:$0xff]  ;;  %v181_v43 = vld [vmem:[%s722_s7 + $0x10] sm:$0xff] }
   0xb   :  { %v376_v41 = vpack.c.bf16 %v180_v38, %v179_v37  ;;  %v182_v44 = vld [vmem:[%s722_s7 + $0x18] sm:$0xff]  ;;  %v378_v45 = vpack.c.bf16 %v198_v42, %v197_v39  ;;  %v199_v46 = vld [vmem:[%s722_s7 + $0xa0] sm:$0xff]  ;;  %v200_v47 = vld [vmem:[%s722_s7 + $0xa8] sm:$0xff] }
   0xc   :  { %375 = vmatprep.subr.bf16.mxu1 %v374_v36  ;;  %v82_v49 = vld [vmem:[%s720_s5 + $0xa0] sm:$0xff]  ;;  %v84_v50 = vld [vmem:[%s720_s5 + $0xb0] sm:$0xff]  ;;  %v380_v51 = vpack.c.bf16 %v182_v44, %v181_v43  ;;  %v87_v53 = vld [vmem:[%s720_s5 + $0xc8] sm:$0xff]  ;;  %v382_v54 = vpack.c.bf16 %v200_v47, %v199_v46 }
   0xd   :  { %353 = vmatpush1.bf16.msra.mxu0 %v352_v20  ;;  %377 = vmatpush3.bf16.msra.mxu1 %v376_v41  ;;  %v183_v55 = vld [vmem:[%s722_s7 + $0x20] sm:$0xff]  ;;  %v184_v56 = vld [vmem:[%s722_s7 + $0x28] sm:$0xff]  ;;  %v89_v57 = vld [vmem:[%s720_s5 + $0xd8] sm:$0xff]  ;;  %v364_v63 = vpack.c.bf16 %v84_v50, %v82_v49 }
   0xe   :  { %355 = vmatprep.subr.bf16.mxu0 %v354_v21  ;;  %379 = vmatprep.subr.bf16.mxu1 %v378_v45  ;;  %v201_v59 = vld [vmem:[%s722_s7 + $0xb0] sm:$0xff]  ;;  %v202_v60 = vld [vmem:[%s722_s7 + $0xb8] sm:$0xff]  ;;  %v86_v61 = vld [vmem:[%s720_s5 + $0xc0] sm:$0xff]  ;;  %v384_v4 = vpack.c.bf16 %v184_v56, %v183_v55  ;;  %v366_v5 = vpack.c.bf16 %v89_v57, %v87_v53 }
   0xf   :  { %v88_v62 = vld [vmem:[%s720_s5 + $0xd0] sm:$0xff]  ;;  %v91_v0 = vld [vmem:[%s720_s5 + $0xe8] sm:$0xff]  ;;  %v36_v1 = vld [vmem:[%s715_s0] sm:$0xff]  ;;  %v386_v6 = vpack.c.bf16 %v202_v60, %v201_v59 }
  0x10   :  { %v304_v2 = vld [vmem:[%s718_s3] ss:$0 sm:$0xff]  ;;  %v185_v7 = vld [vmem:[%s722_s7 + $0x30] sm:$0xff]  ;;  %v186_v8 = vld [vmem:[%s722_s7 + $0x38] sm:$0xff] }
  0x11   :  { %357 = vmatpush1.bf16.msra.mxu0 %v356_v31  ;;  %v45_v3 = vld [vmem:[%s716_s1] sm:$0x1]  ;;  %381 = vmatpush3.bf16.msra.mxu1 %v380_v51 }
  0x12   :  { %359 = vmatprep.subr.bf16.mxu0 %v358_v35  ;;  %383 = vmatprep.subr.bf16.mxu1 %v382_v54 }
  0x15   :  { %361 = vmatpush1.bf16.msra.mxu0 %v360_v48 }
  0x16   :  { %363 = vmatprep.subr.bf16.mxu0 %v362_v52 }
  0x17   :  { %14 = vsyncpa [#allocation3], 0  ;;  %v93_v9 = vld [vmem:[%s720_s5 + $0xf8] sm:$0xff]  ;;  %v50_v10 = vsub.s32 0, %v603_v58  ;;  %v203_v11 = vld [vmem:[%s722_s7 + $0xc0] sm:$0xff]  ;;  %v409_v13 = vpop.eup %408  ;;  %v368_v14 = vpack.c.bf16 %v88_v62, %v86_v61  ;;  %v44_v16 = vsub.f32 %v36_v1, %v304_v2  ;;  %385 = vmatpush3.bf16.msra.mxu1 %v384_v4  ;;  %v388_v18 = vpack.c.bf16 %v186_v8, %v185_v7  ;;  %s435_s12 = smov [#allocation2]  }
  0x18   :  { %v204_v12 = vld [vmem:[%s722_s7 + $0xc8] sm:$0xff]  ;;  %v90_v15 = vld [vmem:[%s720_s5 + $0xe0] sm:$0xff]  ;;  %v46_v17 = vmul.f32 %v409_v13, %v45_v3  ;;  %v370_v19 = vpack.c.bf16 %v93_v9, %v91_v0  ;;  %v92_v20 = vld [vmem:[%s720_s5 + $0xf0] sm:$0xff]  ;;  %387 = vmatprep.subr.bf16.mxu1 %v386_v6  ;;  %v102_v49 = vsub.s32 1, %v603_v58  ;;  %vm288_vm0 = vcmask 64512  }
  0x19   :  { %365 = vmatpush1.bf16.msra.mxu0 %v364_v63  ;;  %v390_v21 = vpack.c.bf16 %v204_v12, %v203_v11  ;;  %v187_v22 = vld [vmem:[%s722_s7 + $0x40] sm:$0xff]  ;;  %v188_v23 = vld [vmem:[%s722_s7 + $0x48] sm:$0xff]  ;;  %v205_v25 = vld [vmem:[%s722_s7 + $0xd0] sm:$0xff]  ;;  %v372_v27 = vpack.c.bf16 %v92_v20, %v90_v15 }
  0x1a   :  { %367 = vmatprep.subr.bf16.mxu0 %v366_v5  ;;  %v51_v24 = vrot.slane %v46_v17, %v50_v10  ;;  %v206_v26 = vld [vmem:[%s722_s7 + $0xd8] sm:$0xff]  ;;  %v305_v29 = vld [vmem:[%s717_s2] ss:$0 sm:$0xff]  ;;  %v392_v30 = vpack.c.bf16 %v188_v23, %v187_v22  ;;  %v189_v32 = vld [vmem:[%s722_s7 + $0x50] sm:$0xff] }
  0x1b   :  { %389 = vmatpush3.bf16.msra.mxu1 %v388_v18  ;;  %v394_v31 = vpack.c.bf16 %v206_v26, %v205_v25  ;;  %v190_v33 = vld [vmem:[%s722_s7 + $0x58] sm:$0xff]  ;;  %v207_v34 = vld [vmem:[%s722_s7 + $0xe0] sm:$0xff]  ;;  %v208_v35 = vld [vmem:[%s722_s7 + $0xe8] sm:$0xff] }
  0x1c   :  { %v53_v28 = vmul.f32 %v51_v24, %v44_v16  ;;  %391 = vmatprep.subr.bf16.mxu1 %v390_v21  ;;  %v396_v37 = vpack.c.bf16 %v190_v33, %v189_v32  ;;  %v398_v38 = vpack.c.bf16 %v208_v35, %v207_v34  ;;  %v191_v39 = vld [vmem:[%s722_s7 + $0x60] sm:$0xff]  ;;  %v192_v40 = vld [vmem:[%s722_s7 + $0x68] sm:$0xff]  ;;  %v209_v42 = vld [vmem:[%s722_s7 + $0xf0] sm:$0xff] }
  0x1d   :  { %369 = vmatpush1.bf16.msra.mxu0 %v368_v14  ;;  %v400_v41 = vpack.c.bf16 %v192_v40, %v191_v39  ;;  %v210_v43 = vld [vmem:[%s722_s7 + $0xf8] sm:$0xff]  ;;  %v193_v45 = vld [vmem:[%s722_s7 + $0x70] sm:$0xff]  ;;  %v94_v48 = vld [vmem:[%s721_s6] sm:$0x3]  ;;  %s296_s6 = sshll.u32 %s435_s12, 4  ;;  %s297_s6 = int_to_ptr.vmem [resolvable:$true] %s296_s6 }
  0x1e   :  { %371 = vmatprep.subr.bf16.mxu0 %v370_v19  ;;  %v61_v36 = vadd.f32 %v305_v29, %v53_v28  ;;  %v402_v44 = vpack.c.bf16 %v210_v43, %v209_v42  ;;  %v194_v46 = vld [vmem:[%s722_s7 + $0x78] sm:$0xff]  ;;  %v99_v50 = vrot.slane %v94_v48, %v50_v10  ;;  %v103_v51 = vrot.slane %v94_v48, %v102_v49  ;;  %v306_v60 = vld [vmem:[%s723_s8] ss:$0 sm:$0xff]  ;;  %s410_s4 = scalar_lea.vmem %s297_s6, 128  ;;  %p415_p1 = scmp.lt.s32.totalorder %s297_s6, %s297_s6 }
  0x1f   :  { %393 = vmatpush3.bf16.msra.mxu1 %v392_v30  ;;  %v404_v47 = vpack.c.bf16 %v194_v46, %v193_v45  ;;  %p411_p0 = scmp.ne.s32.totalorder %s297_s6, %s410_s4  ;;  %p416_p2 = scmp.lt.s32.totalorder %s410_s4, %s410_s4 }
  0x20   :  { %395 = vmatprep.subr.bf16.mxu1 %v394_v31 }
  0x21   :  { %373 = vmatpush1.bf16.msra.mxu0 %v372_v27  ;;  %p417_p3 = por %p416_p2, %p415_p1 }
  0x23   :  { %397 = vmatpush3.bf16.msra.mxu1 %v396_v37  ;;  %p418_p4 = pnand %p417_p3, %p411_p0 }
  0x24   :  { %171 = vmatmul.mubr.f32.vlgmr.msra.gmra.mrb[0].mxu0 %v61_v36  ;;  %399 = vmatprep.subr.bf16.mxu1 %v398_v38 }
  0x27   :  { %401 = vmatpush3.bf16.msra.mxu1 %v400_v41 }
  0x28   :  { %403 = vmatprep.subr.bf16.mxu1 %v402_v44 }
  0x2b   :  { %405 = vmatpush3.bf16.msra.mxu1 %v404_v47 }
  0xf7   :  { %v172_v52 = vpop.f32.mrb[0].mxu0 }
  0xf8   :  { %v173_v53 = vadd.f32 %v172_v52, %v99_v50  ;;  %v174_v54 = vpop.f32.mrb[1].mxu0 }
  0xf9   :  { %v175_v55 = vadd.f32 %v174_v54, %v103_v51 }
  0xfa   :  { %v177_v57 = vmax.f32 %v173_v53, 0.0 }
  0xfb   :  { %v178_v56 = vmax.f32 %v175_v55, 0.0 }
  0xfd   :  { %282 = vmatprep.mubr.f32.mxu1 %v178_v56 }
  0xfe   :  { %283 = vmatmul.mubr.f32.vlgmr.msra.gmra.mrb[0].mxu1 %v177_v57 }
 0x1d1   :  { %v339_v59 = vpop.f32.mrb[0].mxu1 }
 0x1d2   :  { %v340_v61 = vpop.f32.mrb[1].mxu1 }
 0x1d3   :  { %v341_v62 = vadd.f32 %v340_v61, %v339_v59 }
 0x1d5   :  { %v285_v58 = vadd.f32 %v341_v62, %v306_v60 }
 0x1d7   :  { %289 = vst.msk [vmem:[#allocation2] sm:$0xff] %vm288_vm0, %v285_v58 }
 0x1d8   :  { %421 = shalt.err (!%p418_p4)
}
 0x1d9   :  { %s422_s14 = scalar_lea.hbm %s724_s9, 128 }
 0x1da   :  { %p423_p5 = scmp.ne.s32.totalorder %s724_s9, %s422_s14  ;;  %p426_p6 = scmp.lt.u32.totalorder %s422_s14, %s724_s9 }
 0x1dc   :  { %p428_p7 = pnand %p426_p6, %p423_p5 }
 0x1de   :  { %431 = shalt.err (!%p428_p7)
}
 0x1df   :  { %299 = dma.vmem_to_hbm [thread:$0]  %s297_s6, 128, %s724_s9, [#allocation3]  }
 0x1e0   :  { %432 = dma.done.wait [#allocation3], 128  }
 0x1e1   :  { %433 = vsyncadd [#allocation3], 4294967168 }
 0x1e2   :  { %303 = vsyncpa [#allocation3], 1 }

</bundles_post_ra>
